<compile_context>
chip_gen: v7x
topology: tpu7x:2x2x1
jax: 0.10.0
libtpu: 0.0.40
codegen_flags: <defaults>
</compile_context>

<pallas_src>
import functools
import math

import jax
import jax.numpy as jnp
from jax.experimental import pallas as pl
from jax.experimental.pallas import tpu as pltpu


def _round_up(x, m):
    return (x + m - 1) // m * m


def _sublane(dtype):
    # Rows per packed sublane tile: f32 -> 8, bf16 -> 16, int8/fp8 -> 32.
    return max(8, 32 // jnp.dtype(dtype).itemsize)


def _vmem_limit(nbytes):
    # ~30% headroom + compiler-internal scratch; floor at the v5e default
    # scoped limit (16 MiB), cap at v7x's physical 64 MiB.
    return int(min(max(int(nbytes * 1.3) + (2 << 20), 16 << 20), 64 << 20))


def _mogrify_resident_kernel(xh_ref, qwt_ref, qb_ref, rwt_ref, rb_ref, out_ref,
                             *, dx, dh, n_rounds, compute_dtype):
    """All R rounds for one batch tile; weights fully resident in VMEM.

    xh_ref  : (TB, P)       packed [x | h | 0-pad] slab, P = round_up(dx+dh, 128)
    qwt_ref : (R, Dh, Dx)   0.5 * Wq^T per round, compute_dtype
    qb_ref  : (R, 1, Dx)    0.5 * bq per round, f32
    rwt_ref : (R, Dx, Dh)   0.5 * Wr^T per round, compute_dtype
    rb_ref  : (R, 1, Dh)    0.5 * br per round, f32
    out_ref : (TB, P)       packed [x | h | 0-pad] output slab
    """
    x = xh_ref[:, :dx].astype(jnp.float32)
    h = xh_ref[:, dx:dx + dh].astype(jnp.float32)

    # 1 + tanh(z/2) == 2*sigmoid(z); the 0.5 is folded into the weights/biases.
    # TODO(synk): interleave 2 row chunks (MXU of chunk i+1 under the tanh /
    # gating of chunk i) to hide EUP/VPU latency behind the MXU on v6e/v7x.
    for r in range(n_rounds):
        zx = jnp.dot(h.astype(compute_dtype), qwt_ref[r],
                     preferred_element_type=jnp.float32)
        x = (1.0 + jnp.tanh(zx + qb_ref[r])) * x
        zh = jnp.dot(x.astype(compute_dtype), rwt_ref[r],
                     preferred_element_type=jnp.float32)
        h = (1.0 + jnp.tanh(zh + rb_ref[r])) * h

    tb, p = out_ref.shape
    parts = [x, h]
    if p > dx + dh:
        parts.append(jnp.zeros((tb, p - dx - dh), jnp.float32))
    # Single full-width (lane-dense) store -> unmasked vst.
    out_ref[...] = jnp.concatenate(parts, axis=-1).astype(out_ref.dtype)


def _mogrify_streaming_kernel(x_ref, h_ref, qwt_ref, qb_ref, rwt_ref, rb_ref,
                              xo_ref, ho_ref, x_acc, h_acc, *, compute_dtype):
    """One mogrify round per grid step; weights streamed over the R axis.

    Grid: (batch_tiles, R), R innermost ("arbitrary" carry axis).
    """
    r = pl.program_id(1)

    @pl.when(r == 0)
    def _init():
        x_acc[...] = x_ref[...].astype(jnp.float32)
        h_acc[...] = h_ref[...].astype(jnp.float32)

    zx = jnp.dot(h_acc[...].astype(compute_dtype), qwt_ref[0],
                 preferred_element_type=jnp.float32)
    x_new = (1.0 + jnp.tanh(zx + qb_ref[0])) * x_acc[...]
    x_acc[...] = x_new

    zh = jnp.dot(x_new.astype(compute_dtype), rwt_ref[0],
                 preferred_element_type=jnp.float32)
    h_acc[...] = (1.0 + jnp.tanh(zh + rb_ref[0])) * h_acc[...]

    @pl.when(r == pl.num_programs(1) - 1)
    def _finalize():
        xo_ref[...] = x_acc[...].astype(xo_ref.dtype)
        ho_ref[...] = h_acc[...].astype(ho_ref.dtype)


def mogrify(x, h, q_w, q_b, r_w, r_b, *, compute_dtype=jnp.bfloat16,
            batch_tile=256, max_resident_weight_bytes=8 << 20):
    """Fused Mogrify forward.

    x   : (B, Dx),  h : (B, Dh)
    q_w : (R, Dx, Dh), q_b : (R, Dx)   nn.Linear(d_h, d_x) per layer
    r_w : (R, Dh, Dx), r_b : (R, Dh)   nn.Linear(d_x, d_h) per layer
    """
    B, Dx = x.shape
    Bh, Dh = h.shape
    assert B == Bh
    R = q_w.shape[0]
    cds = jnp.dtype(compute_dtype).itemsize

    # One-time parameter prep: transpose to (in, out) so the kernel runs a
    # plain (M,K)x(K,N) MXU matmul (no in-kernel transpose), pre-scale by 0.5
    # for the 1+tanh gate, and cast weights to the MXU-native dtype.
    # TODO(synk): in a real model hoist this to parameter-setup time instead
    # of paying an HBM round-trip over the weight stack every forward.
    qwt = jnp.transpose((0.5 * q_w).astype(compute_dtype), (0, 2, 1))  # (R,Dh,Dx)
    rwt = jnp.transpose((0.5 * r_w).astype(compute_dtype), (0, 2, 1))  # (R,Dx,Dh)
    qb = (0.5 * q_b).astype(jnp.float32).reshape(R, 1, Dx)
    rb = (0.5 * r_b).astype(jnp.float32).reshape(R, 1, Dh)

    slab_dtype = jnp.result_type(x.dtype, h.dtype)
    sub = _sublane(slab_dtype)
    tb = _round_up(min(batch_tile, _round_up(B, sub)), sub)
    Bp = _round_up(B, tb)
    # v7x has 2 TensorCores: give the "parallel" batch axis >= 2 tiles
    # whenever the batch can actually be split (no-op on v5e/v6e).
    if Bp // tb == 1 and Bp > sub:
        tb = _round_up(-(-Bp // 2), sub)
        Bp = _round_up(B, tb)

    weight_bytes = 2 * R * Dx * Dh * cds

    if weight_bytes <= max_resident_weight_bytes:
        # ---------------- resident-weight path ----------------
        P = _round_up(Dx + Dh, 128)
        xh = jnp.concatenate([x.astype(slab_dtype), h.astype(slab_dtype)], axis=1)
        xh = jnp.pad(xh, ((0, Bp - B), (0, P - (Dx + Dh))))

        ss = jnp.dtype(slab_dtype).itemsize
        foot = 2 * (2 * tb * P * ss           # in + out slab tiles (dbl-buffered)
                    + weight_bytes            # both resident weight stacks
                    + R * (Dx + Dh) * 4)      # resident biases

        out = pl.pallas_call(
            functools.partial(_mogrify_resident_kernel, dx=Dx, dh=Dh,
                              n_rounds=R, compute_dtype=compute_dtype),
            out_shape=jax.ShapeDtypeStruct((Bp, P), slab_dtype),
            grid_spec=pltpu.PrefetchScalarGridSpec(
                num_scalar_prefetch=0,
                grid=(Bp // tb,),
                in_specs=[
                    pl.BlockSpec((tb, P), lambda b: (b, 0)),          # xh slab
                    pl.BlockSpec((R, Dh, Dx), lambda b: (0, 0, 0)),   # q weights (resident)
                    pl.BlockSpec((R, 1, Dx), lambda b: (0, 0, 0)),    # q biases
                    pl.BlockSpec((R, Dx, Dh), lambda b: (0, 0, 0)),   # r weights (resident)
                    pl.BlockSpec((R, 1, Dh), lambda b: (0, 0, 0)),    # r biases
                ],
                out_specs=pl.BlockSpec((tb, P), lambda b: (b, 0)),
            ),
            compiler_params=pltpu.CompilerParams(
                dimension_semantics=("parallel",),
                vmem_limit_bytes=_vmem_limit(foot)),
        )(xh, qwt, qb, rwt, rb)
        return (out[:B, :Dx].astype(x.dtype),
                out[:B, Dx:Dx + Dh].astype(h.dtype))

    # ---------------- streaming fallback path ----------------
    # TODO(synk): for D >~ 2K on v7x (64 MiB VMEM) a single round's weight
    # pair no longer double-buffers; tile the weight Dx/Dh dims as well
    # (or stream fp8 weights on v7x).
    xp = jnp.pad(x, ((0, Bp - B), (0, 0)))
    hp = jnp.pad(h, ((0, Bp - B), (0, 0)))
    foot = (2 * (2 * tb * Dx * x.dtype.itemsize
                 + 2 * tb * Dh * h.dtype.itemsize
                 + 2 * Dx * Dh * cds + (Dx + Dh) * 4)
            + tb * (Dx + Dh) * 4)

    xo, ho = pl.pallas_call(
        functools.partial(_mogrify_streaming_kernel, compute_dtype=compute_dtype),
        out_shape=(jax.ShapeDtypeStruct((Bp, Dx), x.dtype),
                   jax.ShapeDtypeStruct((Bp, Dh), h.dtype)),
        grid_spec=pltpu.PrefetchScalarGridSpec(
            num_scalar_prefetch=0,
            grid=(Bp // tb, R),
            in_specs=[
                pl.BlockSpec((tb, Dx), lambda b, r: (b, 0)),        # x
                pl.BlockSpec((tb, Dh), lambda b, r: (b, 0)),        # h
                pl.BlockSpec((1, Dh, Dx), lambda b, r: (r, 0, 0)),  # q weight (streamed)
                pl.BlockSpec((1, 1, Dx), lambda b, r: (r, 0, 0)),   # q bias
                pl.BlockSpec((1, Dx, Dh), lambda b, r: (r, 0, 0)),  # r weight (streamed)
                pl.BlockSpec((1, 1, Dh), lambda b, r: (r, 0, 0)),   # r bias
            ],
            out_specs=(
                pl.BlockSpec((tb, Dx), lambda b, r: (b, 0)),
                pl.BlockSpec((tb, Dh), lambda b, r: (b, 0)),
            ),
            scratch_shapes=[pltpu.VMEM((tb, Dx), jnp.float32),   # carried x
                            pltpu.VMEM((tb, Dh), jnp.float32)],  # carried h
        ),
        compiler_params=pltpu.CompilerParams(
            dimension_semantics=("parallel", "arbitrary"),
            vmem_limit_bytes=_vmem_limit(foot)),
    )(xp, hp, qwt, qb, rwt, rb)
    return xo[:B], ho[:B]


def mogrify_ref(x, h, q_w, q_b, r_w, r_b, compute_dtype=jnp.float32):
    """Pure-JAX reference mirroring the PyTorch module.  With
    compute_dtype=bf16 it mimics the kernel's bf16-operand / f32-accumulate
    matmuls (note 1 + tanh(z/2) == 2*sigmoid(z) exactly)."""
    x = x.astype(jnp.float32)
    h = h.astype(jnp.float32)
    R = q_w.shape[0]
    for r in range(R):
        zx = jnp.dot(h.astype(compute_dtype), q_w[r].astype(compute_dtype).T,
                     preferred_element_type=jnp.float32) + q_b[r]
        x = 2.0 * jax.nn.sigmoid(zx) * x
        zh = jnp.dot(x.astype(compute_dtype), r_w[r].astype(compute_dtype).T,
                     preferred_element_type=jnp.float32) + r_b[r]
        h = 2.0 * jax.nn.sigmoid(zh) * h
    return x, h


if __name__ == "__main__":
    B, Dx, Dh, R = 8, 32, 32, 5   # batch, x-dim, hidden-dim, mogrify rounds

    key = jax.random.PRNGKey(0)
    kx, kh, kqw, kqb, krw, krb = jax.random.split(key, 6)

    x = jax.random.normal(kx, (B, Dx), dtype=jnp.float32)
    h = jax.random.normal(kh, (B, Dh), dtype=jnp.float32)

    # Deterministic nn.Linear-style init (uniform +-1/sqrt(fan_in)); one
    # layer's params tiled R times = copy.deepcopy clone semantics at init.
    bound_q = 1.0 / math.sqrt(Dh)
    bound_r = 1.0 / math.sqrt(Dx)
    q_w1 = jax.random.uniform(kqw, (Dx, Dh), jnp.float32, -bound_q, bound_q)
    q_b1 = jax.random.uniform(kqb, (Dx,), jnp.float32, -bound_q, bound_q)
    r_w1 = jax.random.uniform(krw, (Dh, Dx), jnp.float32, -bound_r, bound_r)
    r_b1 = jax.random.uniform(krb, (Dh,), jnp.float32, -bound_r, bound_r)

    q_w = jnp.tile(q_w1[None], (R, 1, 1))
    q_b = jnp.tile(q_b1[None], (R, 1))
    r_w = jnp.tile(r_w1[None], (R, 1, 1))
    r_b = jnp.tile(r_b1[None], (R, 1))

    # Primary (resident-weight) path.
    x_out, h_out = mogrify(x, h, q_w, q_b, r_w, r_b)
    jax.block_until_ready((x_out, h_out))

    # Tight check against a reference using the same bf16-operand / f32-acc
    # matmuls as the kernel.
    x_bf, h_bf = mogrify_ref(x, h, q_w, q_b, r_w, r_b, compute_dtype=jnp.bfloat16)
    assert jnp.allclose(x_out, x_bf, atol=2e-3, rtol=2e-3)
    assert jnp.allclose(h_out, h_bf, atol=2e-3, rtol=2e-3)

    # Loose sanity check against the full-f32 PyTorch-equivalent math.
    x_f32, h_f32 = mogrify_ref(x, h, q_w, q_b, r_w, r_b)
    assert jnp.allclose(x_out, x_f32, atol=1e-1, rtol=1e-1)
    assert jnp.allclose(h_out, h_f32, atol=1e-1, rtol=1e-1)

    # Also exercise the streaming fallback (used when R*2*Dx*Dh weights would
    # not fit the resident VMEM budget).
    x_s, h_s = mogrify(x, h, q_w, q_b, r_w, r_b, max_resident_weight_bytes=0)
    jax.block_until_ready((x_s, h_s))
    assert jnp.allclose(x_s, x_bf, atol=2e-3, rtol=2e-3)
    assert jnp.allclose(h_s, h_bf, atol=2e-3, rtol=2e-3)

    print("KERNEL_OK")
</pallas_src>

<mosaic_0001>
module attributes {stable_mosaic.version = 11 : i64} {
  func.func @_mogrify_resident_kernel(%arg0: i32, %arg1: memref<8x128xf32, #tpu.memory_space<vmem>>, %arg2: memref<5x32x32xbf16, #tpu.memory_space<vmem>>, %arg3: memref<5x1x32xf32, #tpu.memory_space<vmem>>, %arg4: memref<5x32x32xbf16, #tpu.memory_space<vmem>>, %arg5: memref<5x1x32xf32, #tpu.memory_space<vmem>>, %arg6: memref<8x128xf32, #tpu.memory_space<vmem>>) attributes {dimension_semantics = [#tpu.dimension_semantics<parallel>], iteration_bounds = array<i64: 1>, scalar_prefetch = 0 : i64, scratch_operands = 0 : i64, tpu.core_type = #tpu.core_type<tc>, window_params = [{transform_indices = @transform_0, window_bounds = array<i64: 8, 128>}, {pipeline_mode = #tpu.pipeline_mode<synchronous>, transform_indices = @transform_1, window_bounds = array<i64: 5, 32, 32>}, {pipeline_mode = #tpu.pipeline_mode<synchronous>, transform_indices = @transform_2, window_bounds = array<i64: 5, 1, 32>}, {pipeline_mode = #tpu.pipeline_mode<synchronous>, transform_indices = @transform_3, window_bounds = array<i64: 5, 32, 32>}, {pipeline_mode = #tpu.pipeline_mode<synchronous>, transform_indices = @transform_4, window_bounds = array<i64: 5, 1, 32>}, {transform_indices = @transform_5, window_bounds = array<i64: 8, 128>}]} {
    %c0 = arith.constant 0 : index
    %c0_0 = arith.constant 0 : index
    %0 = vector.load %arg1[%c0, %c0_0] : memref<8x128xf32, #tpu.memory_space<vmem>>, vector<8x32xf32>
    %c0_1 = arith.constant 0 : index
    %c32 = arith.constant 32 : index
    %1 = vector.load %arg1[%c0_1, %c32] : memref<8x128xf32, #tpu.memory_space<vmem>>, vector<8x32xf32>
    %2 = arith.truncf %1 : vector<8x32xf32> to vector<8x32xbf16>
    %c0_2 = arith.constant 0 : index
    %c0_3 = arith.constant 0 : index
    %c0_4 = arith.constant 0 : index
    %3 = vector.load %arg2[%c0_2, %c0_3, %c0_4] : memref<5x32x32xbf16, #tpu.memory_space<vmem>>, vector<1x32x32xbf16>
    %4 = vector.shape_cast %3 : vector<1x32x32xbf16> to vector<32x32xbf16>
    %cst = arith.constant dense<0.000000e+00> : vector<8x32xf32>
    %5 = tpu.matmul %2, %4, %cst {dimension_numbers = #tpu.dot_dimension_numbers<[1], [0], [0], [1], [0, 0, 1, 1], [], []>} : vector<8x32xbf16>, vector<32x32xbf16>, vector<8x32xf32> -> vector<8x32xf32>
    %c0_5 = arith.constant 0 : index
    %c0_6 = arith.constant 0 : index
    %c0_7 = arith.constant 0 : index
    %6 = vector.load %arg3[%c0_5, %c0_6, %c0_7] : memref<5x1x32xf32, #tpu.memory_space<vmem>>, vector<1x1x32xf32>
    %7 = vector.shape_cast %6 : vector<1x1x32xf32> to vector<1x32xf32>
    %8 = vector.broadcast %7 : vector<1x32xf32> to vector<8x32xf32>
    %9 = arith.addf %5, %8 : vector<8x32xf32>
    %10 = math.tanh %9 : vector<8x32xf32>
    %cst_8 = arith.constant 1.000000e+00 : f32
    %11 = vector.broadcast %cst_8 : f32 to vector<8x32xf32>
    %12 = arith.addf %11, %10 : vector<8x32xf32>
    %13 = arith.mulf %12, %0 : vector<8x32xf32>
    %14 = arith.truncf %13 : vector<8x32xf32> to vector<8x32xbf16>
    %c0_9 = arith.constant 0 : index
    %c0_10 = arith.constant 0 : index
    %c0_11 = arith.constant 0 : index
    %15 = vector.load %arg4[%c0_9, %c0_10, %c0_11] : memref<5x32x32xbf16, #tpu.memory_space<vmem>>, vector<1x32x32xbf16>
    %16 = vector.shape_cast %15 : vector<1x32x32xbf16> to vector<32x32xbf16>
    %cst_12 = arith.constant dense<0.000000e+00> : vector<8x32xf32>
    %17 = tpu.matmul %14, %16, %cst_12 {dimension_numbers = #tpu.dot_dimension_numbers<[1], [0], [0], [1], [0, 0, 1, 1], [], []>} : vector<8x32xbf16>, vector<32x32xbf16>, vector<8x32xf32> -> vector<8x32xf32>
    %c0_13 = arith.constant 0 : index
    %c0_14 = arith.constant 0 : index
    %c0_15 = arith.constant 0 : index
    %18 = vector.load %arg5[%c0_13, %c0_14, %c0_15] : memref<5x1x32xf32, #tpu.memory_space<vmem>>, vector<1x1x32xf32>
    %19 = vector.shape_cast %18 : vector<1x1x32xf32> to vector<1x32xf32>
    %20 = vector.broadcast %19 : vector<1x32xf32> to vector<8x32xf32>
    %21 = arith.addf %17, %20 : vector<8x32xf32>
    %22 = math.tanh %21 : vector<8x32xf32>
    %cst_16 = arith.constant 1.000000e+00 : f32
    %23 = vector.broadcast %cst_16 : f32 to vector<8x32xf32>
    %24 = arith.addf %23, %22 : vector<8x32xf32>
    %25 = arith.mulf %24, %1 : vector<8x32xf32>
    %26 = arith.truncf %25 : vector<8x32xf32> to vector<8x32xbf16>
    %c1 = arith.constant 1 : index
    %c0_17 = arith.constant 0 : index
    %c0_18 = arith.constant 0 : index
    %27 = vector.load %arg2[%c1, %c0_17, %c0_18] : memref<5x32x32xbf16, #tpu.memory_space<vmem>>, vector<1x32x32xbf16>
    %28 = vector.shape_cast %27 : vector<1x32x32xbf16> to vector<32x32xbf16>
    %cst_19 = arith.constant dense<0.000000e+00> : vector<8x32xf32>
    %29 = tpu.matmul %26, %28, %cst_19 {dimension_numbers = #tpu.dot_dimension_numbers<[1], [0], [0], [1], [0, 0, 1, 1], [], []>} : vector<8x32xbf16>, vector<32x32xbf16>, vector<8x32xf32> -> vector<8x32xf32>
    %c1_20 = arith.constant 1 : index
    %c0_21 = arith.constant 0 : index
    %c0_22 = arith.constant 0 : index
    %30 = vector.load %arg3[%c1_20, %c0_21, %c0_22] : memref<5x1x32xf32, #tpu.memory_space<vmem>>, vector<1x1x32xf32>
    %31 = vector.shape_cast %30 : vector<1x1x32xf32> to vector<1x32xf32>
    %32 = vector.broadcast %31 : vector<1x32xf32> to vector<8x32xf32>
    %33 = arith.addf %29, %32 : vector<8x32xf32>
    %34 = math.tanh %33 : vector<8x32xf32>
    %cst_23 = arith.constant 1.000000e+00 : f32
    %35 = vector.broadcast %cst_23 : f32 to vector<8x32xf32>
    %36 = arith.addf %35, %34 : vector<8x32xf32>
    %37 = arith.mulf %36, %13 : vector<8x32xf32>
    %38 = arith.truncf %37 : vector<8x32xf32> to vector<8x32xbf16>
    %c1_24 = arith.constant 1 : index
    %c0_25 = arith.constant 0 : index
    %c0_26 = arith.constant 0 : index
    %39 = vector.load %arg4[%c1_24, %c0_25, %c0_26] : memref<5x32x32xbf16, #tpu.memory_space<vmem>>, vector<1x32x32xbf16>
    %40 = vector.shape_cast %39 : vector<1x32x32xbf16> to vector<32x32xbf16>
    %cst_27 = arith.constant dense<0.000000e+00> : vector<8x32xf32>
    %41 = tpu.matmul %38, %40, %cst_27 {dimension_numbers = #tpu.dot_dimension_numbers<[1], [0], [0], [1], [0, 0, 1, 1], [], []>} : vector<8x32xbf16>, vector<32x32xbf16>, vector<8x32xf32> -> vector<8x32xf32>
    %c1_28 = arith.constant 1 : index
    %c0_29 = arith.constant 0 : index
    %c0_30 = arith.constant 0 : index
    %42 = vector.load %arg5[%c1_28, %c0_29, %c0_30] : memref<5x1x32xf32, #tpu.memory_space<vmem>>, vector<1x1x32xf32>
    %43 = vector.shape_cast %42 : vector<1x1x32xf32> to vector<1x32xf32>
    %44 = vector.broadcast %43 : vector<1x32xf32> to vector<8x32xf32>
    %45 = arith.addf %41, %44 : vector<8x32xf32>
    %46 = math.tanh %45 : vector<8x32xf32>
    %cst_31 = arith.constant 1.000000e+00 : f32
    %47 = vector.broadcast %cst_31 : f32 to vector<8x32xf32>
    %48 = arith.addf %47, %46 : vector<8x32xf32>
    %49 = arith.mulf %48, %25 : vector<8x32xf32>
    %50 = arith.truncf %49 : vector<8x32xf32> to vector<8x32xbf16>
    %c2 = arith.constant 2 : index
    %c0_32 = arith.constant 0 : index
    %c0_33 = arith.constant 0 : index
    %51 = vector.load %arg2[%c2, %c0_32, %c0_33] : memref<5x32x32xbf16, #tpu.memory_space<vmem>>, vector<1x32x32xbf16>
    %52 = vector.shape_cast %51 : vector<1x32x32xbf16> to vector<32x32xbf16>
    %cst_34 = arith.constant dense<0.000000e+00> : vector<8x32xf32>
    %53 = tpu.matmul %50, %52, %cst_34 {dimension_numbers = #tpu.dot_dimension_numbers<[1], [0], [0], [1], [0, 0, 1, 1], [], []>} : vector<8x32xbf16>, vector<32x32xbf16>, vector<8x32xf32> -> vector<8x32xf32>
    %c2_35 = arith.constant 2 : index
    %c0_36 = arith.constant 0 : index
    %c0_37 = arith.constant 0 : index
    %54 = vector.load %arg3[%c2_35, %c0_36, %c0_37] : memref<5x1x32xf32, #tpu.memory_space<vmem>>, vector<1x1x32xf32>
    %55 = vector.shape_cast %54 : vector<1x1x32xf32> to vector<1x32xf32>
    %56 = vector.broadcast %55 : vector<1x32xf32> to vector<8x32xf32>
    %57 = arith.addf %53, %56 : vector<8x32xf32>
    %58 = math.tanh %57 : vector<8x32xf32>
    %cst_38 = arith.constant 1.000000e+00 : f32
    %59 = vector.broadcast %cst_38 : f32 to vector<8x32xf32>
    %60 = arith.addf %59, %58 : vector<8x32xf32>
    %61 = arith.mulf %60, %37 : vector<8x32xf32>
    %62 = arith.truncf %61 : vector<8x32xf32> to vector<8x32xbf16>
    %c2_39 = arith.constant 2 : index
    %c0_40 = arith.constant 0 : index
    %c0_41 = arith.constant 0 : index
    %63 = vector.load %arg4[%c2_39, %c0_40, %c0_41] : memref<5x32x32xbf16, #tpu.memory_space<vmem>>, vector<1x32x32xbf16>
    %64 = vector.shape_cast %63 : vector<1x32x32xbf16> to vector<32x32xbf16>
    %cst_42 = arith.constant dense<0.000000e+00> : vector<8x32xf32>
    %65 = tpu.matmul %62, %64, %cst_42 {dimension_numbers = #tpu.dot_dimension_numbers<[1], [0], [0], [1], [0, 0, 1, 1], [], []>} : vector<8x32xbf16>, vector<32x32xbf16>, vector<8x32xf32> -> vector<8x32xf32>
    %c2_43 = arith.constant 2 : index
    %c0_44 = arith.constant 0 : index
    %c0_45 = arith.constant 0 : index
    %66 = vector.load %arg5[%c2_43, %c0_44, %c0_45] : memref<5x1x32xf32, #tpu.memory_space<vmem>>, vector<1x1x32xf32>
    %67 = vector.shape_cast %66 : vector<1x1x32xf32> to vector<1x32xf32>
    %68 = vector.broadcast %67 : vector<1x32xf32> to vector<8x32xf32>
    %69 = arith.addf %65, %68 : vector<8x32xf32>
    %70 = math.tanh %69 : vector<8x32xf32>
    %cst_46 = arith.constant 1.000000e+00 : f32
    %71 = vector.broadcast %cst_46 : f32 to vector<8x32xf32>
    %72 = arith.addf %71, %70 : vector<8x32xf32>
    %73 = arith.mulf %72, %49 : vector<8x32xf32>
    %74 = arith.truncf %73 : vector<8x32xf32> to vector<8x32xbf16>
    %c3 = arith.constant 3 : index
    %c0_47 = arith.constant 0 : index
    %c0_48 = arith.constant 0 : index
    %75 = vector.load %arg2[%c3, %c0_47, %c0_48] : memref<5x32x32xbf16, #tpu.memory_space<vmem>>, vector<1x32x32xbf16>
    %76 = vector.shape_cast %75 : vector<1x32x32xbf16> to vector<32x32xbf16>
    %cst_49 = arith.constant dense<0.000000e+00> : vector<8x32xf32>
    %77 = tpu.matmul %74, %76, %cst_49 {dimension_numbers = #tpu.dot_dimension_numbers<[1], [0], [0], [1], [0, 0, 1, 1], [], []>} : vector<8x32xbf16>, vector<32x32xbf16>, vector<8x32xf32> -> vector<8x32xf32>
    %c3_50 = arith.constant 3 : index
    %c0_51 = arith.constant 0 : index
    %c0_52 = arith.constant 0 : index
    %78 = vector.load %arg3[%c3_50, %c0_51, %c0_52] : memref<5x1x32xf32, #tpu.memory_space<vmem>>, vector<1x1x32xf32>
    %79 = vector.shape_cast %78 : vector<1x1x32xf32> to vector<1x32xf32>
    %80 = vector.broadcast %79 : vector<1x32xf32> to vector<8x32xf32>
    %81 = arith.addf %77, %80 : vector<8x32xf32>
    %82 = math.tanh %81 : vector<8x32xf32>
    %cst_53 = arith.constant 1.000000e+00 : f32
    %83 = vector.broadcast %cst_53 : f32 to vector<8x32xf32>
    %84 = arith.addf %83, %82 : vector<8x32xf32>
    %85 = arith.mulf %84, %61 : vector<8x32xf32>
    %86 = arith.truncf %85 : vector<8x32xf32> to vector<8x32xbf16>
    %c3_54 = arith.constant 3 : index
    %c0_55 = arith.constant 0 : index
    %c0_56 = arith.constant 0 : index
    %87 = vector.load %arg4[%c3_54, %c0_55, %c0_56] : memref<5x32x32xbf16, #tpu.memory_space<vmem>>, vector<1x32x32xbf16>
    %88 = vector.shape_cast %87 : vector<1x32x32xbf16> to vector<32x32xbf16>
    %cst_57 = arith.constant dense<0.000000e+00> : vector<8x32xf32>
    %89 = tpu.matmul %86, %88, %cst_57 {dimension_numbers = #tpu.dot_dimension_numbers<[1], [0], [0], [1], [0, 0, 1, 1], [], []>} : vector<8x32xbf16>, vector<32x32xbf16>, vector<8x32xf32> -> vector<8x32xf32>
    %c3_58 = arith.constant 3 : index
    %c0_59 = arith.constant 0 : index
    %c0_60 = arith.constant 0 : index
    %90 = vector.load %arg5[%c3_58, %c0_59, %c0_60] : memref<5x1x32xf32, #tpu.memory_space<vmem>>, vector<1x1x32xf32>
    %91 = vector.shape_cast %90 : vector<1x1x32xf32> to vector<1x32xf32>
    %92 = vector.broadcast %91 : vector<1x32xf32> to vector<8x32xf32>
    %93 = arith.addf %89, %92 : vector<8x32xf32>
    %94 = math.tanh %93 : vector<8x32xf32>
    %cst_61 = arith.constant 1.000000e+00 : f32
    %95 = vector.broadcast %cst_61 : f32 to vector<8x32xf32>
    %96 = arith.addf %95, %94 : vector<8x32xf32>
    %97 = arith.mulf %96, %73 : vector<8x32xf32>
    %98 = arith.truncf %97 : vector<8x32xf32> to vector<8x32xbf16>
    %c4 = arith.constant 4 : index
    %c0_62 = arith.constant 0 : index
    %c0_63 = arith.constant 0 : index
    %99 = vector.load %arg2[%c4, %c0_62, %c0_63] : memref<5x32x32xbf16, #tpu.memory_space<vmem>>, vector<1x32x32xbf16>
    %100 = vector.shape_cast %99 : vector<1x32x32xbf16> to vector<32x32xbf16>
    %cst_64 = arith.constant dense<0.000000e+00> : vector<8x32xf32>
    %101 = tpu.matmul %98, %100, %cst_64 {dimension_numbers = #tpu.dot_dimension_numbers<[1], [0], [0], [1], [0, 0, 1, 1], [], []>} : vector<8x32xbf16>, vector<32x32xbf16>, vector<8x32xf32> -> vector<8x32xf32>
    %c4_65 = arith.constant 4 : index
    %c0_66 = arith.constant 0 : index
    %c0_67 = arith.constant 0 : index
    %102 = vector.load %arg3[%c4_65, %c0_66, %c0_67] : memref<5x1x32xf32, #tpu.memory_space<vmem>>, vector<1x1x32xf32>
    %103 = vector.shape_cast %102 : vector<1x1x32xf32> to vector<1x32xf32>
    %104 = vector.broadcast %103 : vector<1x32xf32> to vector<8x32xf32>
    %105 = arith.addf %101, %104 : vector<8x32xf32>
    %106 = math.tanh %105 : vector<8x32xf32>
    %cst_68 = arith.constant 1.000000e+00 : f32
    %107 = vector.broadcast %cst_68 : f32 to vector<8x32xf32>
    %108 = arith.addf %107, %106 : vector<8x32xf32>
    %109 = arith.mulf %108, %85 : vector<8x32xf32>
    %110 = arith.truncf %109 : vector<8x32xf32> to vector<8x32xbf16>
    %c4_69 = arith.constant 4 : index
    %c0_70 = arith.constant 0 : index
    %c0_71 = arith.constant 0 : index
    %111 = vector.load %arg4[%c4_69, %c0_70, %c0_71] : memref<5x32x32xbf16, #tpu.memory_space<vmem>>, vector<1x32x32xbf16>
    %112 = vector.shape_cast %111 : vector<1x32x32xbf16> to vector<32x32xbf16>
    %cst_72 = arith.constant dense<0.000000e+00> : vector<8x32xf32>
    %113 = tpu.matmul %110, %112, %cst_72 {dimension_numbers = #tpu.dot_dimension_numbers<[1], [0], [0], [1], [0, 0, 1, 1], [], []>} : vector<8x32xbf16>, vector<32x32xbf16>, vector<8x32xf32> -> vector<8x32xf32>
    %c4_73 = arith.constant 4 : index
    %c0_74 = arith.constant 0 : index
    %c0_75 = arith.constant 0 : index
    %114 = vector.load %arg5[%c4_73, %c0_74, %c0_75] : memref<5x1x32xf32, #tpu.memory_space<vmem>>, vector<1x1x32xf32>
    %115 = vector.shape_cast %114 : vector<1x1x32xf32> to vector<1x32xf32>
    %116 = vector.broadcast %115 : vector<1x32xf32> to vector<8x32xf32>
    %117 = arith.addf %113, %116 : vector<8x32xf32>
    %118 = math.tanh %117 : vector<8x32xf32>
    %cst_76 = arith.constant 1.000000e+00 : f32
    %119 = vector.broadcast %cst_76 : f32 to vector<8x32xf32>
    %120 = arith.addf %119, %118 : vector<8x32xf32>
    %121 = arith.mulf %120, %97 : vector<8x32xf32>
    %cst_77 = arith.constant 0.000000e+00 : f32
    %122 = vector.broadcast %cst_77 : f32 to vector<8x64xf32>
    %123 = tpu.concatenate %109, %121, %122 in 1 : vector<8x32xf32>, vector<8x32xf32>, vector<8x64xf32> -> vector<8x128xf32>
    %c0_78 = arith.constant 0 : index
    %c0_79 = arith.constant 0 : index
    %124 = vector.load %arg6[%c0_78, %c0_79] : memref<8x128xf32, #tpu.memory_space<vmem>>, vector<8x128xf32>
    tpu.vector_store %arg6[%c0_78, %c0_79], %123 {strides = array<i32>} : memref<8x128xf32, #tpu.memory_space<vmem>>, vector<8x128xf32>,
    return
  }
  func.func @transform_0(%arg0: i32) -> (i32, i32) {
    %c0_i32 = arith.constant 0 : i32
    %c0_i32_0 = arith.constant 0 : i32
    return %arg0, %c0_i32 : i32, i32
  }
  func.func @transform_1(%arg0: i32) -> (i32, i32, i32) {
    %c0_i32 = arith.constant 0 : i32
    %c0_i32_0 = arith.constant 0 : i32
    %c0_i32_1 = arith.constant 0 : i32
    %c0_i32_2 = arith.constant 0 : i32
    return %c0_i32, %c0_i32_0, %c0_i32_1 : i32, i32, i32
  }
  func.func @transform_2(%arg0: i32) -> (i32, i32, i32) {
    %c0_i32 = arith.constant 0 : i32
    %c0_i32_0 = arith.constant 0 : i32
    %c0_i32_1 = arith.constant 0 : i32
    %c0_i32_2 = arith.constant 0 : i32
    return %c0_i32, %c0_i32_0, %c0_i32_1 : i32, i32, i32
  }
  func.func @transform_3(%arg0: i32) -> (i32, i32, i32) {
    %c0_i32 = arith.constant 0 : i32
    %c0_i32_0 = arith.constant 0 : i32
    %c0_i32_1 = arith.constant 0 : i32
    %c0_i32_2 = arith.constant 0 : i32
    return %c0_i32, %c0_i32_0, %c0_i32_1 : i32, i32, i32
  }
  func.func @transform_4(%arg0: i32) -> (i32, i32, i32) {
    %c0_i32 = arith.constant 0 : i32
    %c0_i32_0 = arith.constant 0 : i32
    %c0_i32_1 = arith.constant 0 : i32
    %c0_i32_2 = arith.constant 0 : i32
    return %c0_i32, %c0_i32_0, %c0_i32_1 : i32, i32, i32
  }
  func.func @transform_5(%arg0: i32) -> (i32, i32) {
    %c0_i32 = arith.constant 0 : i32
    %c0_i32_0 = arith.constant 0 : i32
    return %arg0, %c0_i32 : i32, i32
  }
}

</mosaic_0001>

<bundles_post_ra>
// kernel: tpu_custom_call.1
= control target key start
LH: loop header
LB: loop body
LE: loop exit
PB: predicated region body
PF: predicated region fallthrough
CT: control target
= control target key end

     0   :  { %10 = vsyncpa [#allocation3], 0  ;;  %s1287_s0 = inlined_call_operand.hbm [shape: f32[8,128], index: 0, kind: input, shape index: {}]   ;;  %s1288_s1 = inlined_call_operand.hbm [shape: bf16[5,32,32], index: 1, kind: input, shape index: {}]   ;;  %s1289_s2 = inlined_call_operand.vmem [shape: f32[5,1,32], index: 2, kind: input, shape index: {}]   ;;  %s1290_s3 = inlined_call_operand.hbm [shape: bf16[5,32,32], index: 3, kind: input, shape index: {}]   ;;  %s1291_s4 = inlined_call_operand.vmem [shape: f32[5,1,32], index: 4, kind: input, shape index: {}]   ;;  %s1292_s5 = inlined_call_operand.hbm [shape: f32[8,128], index: 5, kind: output, shape index: {}]  }
   0x1   :  { %11 = vsyncpa [#allocation6], 0 }
   0x2   :  { %12 = vsyncpa [#allocation4], 0  ;;  %s1112_s18 = smov [#allocation5]   ;;  %s1018_s22 = scalar_lea.hbm %s1288_s1, 1280 }
   0x3   :  { %s28_s19 = sshll.u32 %s1112_s18, 4  ;;  %p1019_p0 = scmp.ne.s32.totalorder %s1288_s1, %s1018_s22  ;;  %s29_s19 = int_to_ptr.vmem [resolvable:$true] %s28_s19 }
   0x4   :  { %p1022_p1 = scmp.lt.u32.totalorder %s1018_s22, %s1288_s1 }
   0x6   :  { %p1024_p2 = pnand %p1022_p1, %p1019_p0 }
   0x8   :  { %1027 = shalt.err (!%p1024_p2)
}
   0x9   :  { %s1028_s27 = scalar_lea.vmem %s29_s19, 1280  ;;  %p1033_p4 = scmp.lt.s32.totalorder %s29_s19, %s29_s19 }
   0xa   :  { %p1029_p3 = scmp.ne.s32.totalorder %s29_s19, %s1028_s27  ;;  %p1034_p5 = scmp.lt.s32.totalorder %s1028_s27, %s1028_s27 }
   0xc   :  { %p1035_p6 = por %p1034_p5, %p1033_p4 }
   0xe   :  { %p1036_p7 = pnand %p1035_p6, %p1029_p3 }
  0x10   :  { %1039 = shalt.err (!%p1036_p7)
}
  0x11   :  { %s1113_s28 = smov 64   ;;  %s1114_s29 = smov 4  }
  0x12   :  { %34 = dma.hbm_to_vmem [thread:$0]  %s1288_s1, 1280, %s29_s19, [#allocation6], %s1113_s28, %s1113_s28, %s1114_s29  }
  0x13   :  { %s1115_s7 = smov [#allocation2]   ;;  %s1116_s9 = smov [#allocation7]  }
  0x14   :  { %s19_s8 = sshll.u32 %s1115_s7, 4  ;;  %s42_s10 = sshll.u32 %s1116_s9, 4  ;;  %s20_s8 = int_to_ptr.vmem [resolvable:$true] %s19_s8  ;;  %s43_s10 = int_to_ptr.vmem [resolvable:$true] %s42_s10 }
  0x15   :  { %s1040_s13 = scalar_lea.hbm %s1287_s0, 128 }
  0x16   :  { %p1041_p8 = scmp.ne.s32.totalorder %s1287_s0, %s1040_s13  ;;  %p1044_p9 = scmp.lt.u32.totalorder %s1040_s13, %s1287_s0 }
  0x18   :  { %p1046_p10 = pnand %p1044_p9, %p1041_p8 }
  0x1a   :  { %1049 = shalt.err (!%p1046_p10)
}
  0x1b   :  { %s1050_s1 = scalar_lea.vmem %s20_s8, 128  ;;  %p1055_p12 = scmp.lt.s32.totalorder %s20_s8, %s20_s8 }
  0x1c   :  { %p1051_p11 = scmp.ne.s32.totalorder %s20_s8, %s1050_s1  ;;  %p1056_p13 = scmp.lt.s32.totalorder %s1050_s1, %s1050_s1 }
  0x1e   :  { %p1057_p0 = por %p1056_p13, %p1055_p12 }
  0x20   :  { %p1058_p1 = pnand %p1057_p0, %p1051_p11 }
  0x22   :  { %1061 = shalt.err (!%p1058_p1)
}
  0x23   :  { %22 = dma.hbm_to_vmem [thread:$0]  %s1287_s0, 128, %s20_s8, [#allocation3]  }
  0x24   :  { %s1062_s22 = scalar_lea.hbm %s1290_s3, 1280 }
  0x25   :  { %p1063_p2 = scmp.ne.s32.totalorder %s1290_s3, %s1062_s22  ;;  %p1066_p3 = scmp.lt.u32.totalorder %s1062_s22, %s1290_s3 }
  0x27   :  { %p1068_p4 = pnand %p1066_p3, %p1063_p2 }
  0x29   :  { %1071 = shalt.err (!%p1068_p4)
}
  0x2a   :  { %s1072_s27 = scalar_lea.vmem %s43_s10, 1280  ;;  %p1077_p6 = scmp.lt.s32.totalorder %s43_s10, %s43_s10 }
  0x2b   :  { %p1073_p5 = scmp.ne.s32.totalorder %s43_s10, %s1072_s27  ;;  %p1078_p7 = scmp.lt.s32.totalorder %s1072_s27, %s1072_s27 }
  0x2d   :  { %p1079_p8 = por %p1078_p7, %p1077_p6 }
  0x2f   :  { %p1080_p9 = pnand %p1079_p8, %p1073_p5 }
  0x31   :  { %1083 = shalt.err (!%p1080_p9)
}
  0x32   :  { %48 = dma.hbm_to_vmem [thread:$0]  %s1290_s3, 1280, %s43_s10, [#allocation6], %s1113_s28, %s1113_s28, %s1114_s29  }
  0x33   :  { %1106 = dma.done.wait [#allocation3], 128  }
  0x34   :  { %1107 = vsyncadd [#allocation3], 4294967168 }
  0x35   :  { %1108 = dma.done.wait [#allocation6], 2560  }
  0x36   :  { %1109 = vsyncadd [#allocation6], 4294964736  ;;  %v1117_v0 = vmov 0.0   ;;  %vm1118_vm0 = vmmov 0   ;;  %v61_v1 = vld [vmem:[#allocation2] sm:$0xff]  ;;  %v978_v3 = vld [vmem:[#allocation5] sm:$0xff]  }
  0x37   :  { %888 = vmatprep.subr.bf16.mxu0 %v1117_v0  ;;  %892 = vmatprep.mubr.msk.bf16.mxu0 %vm1118_vm0, %v1117_v0  ;;  %v62_v2 = vpack.c.bf16 %v61_v1, %v61_v1  ;;  %v979_v4 = vld [vmem:[#allocation5 + $0x8] sm:$0xff]   ;;  %s1119_s3 = smov 96   ;;  %vm89_vm1 = vcmask 261120   ;;  %v980_v6 = vld [vmem:[#allocation7] sm:$0xff]   ;;  %v981_v7 = vld [vmem:[#allocation7 + $0x8] sm:$0xff]   ;;  %s1121_s23 = smov [#allocation8]  }
  0x38   :  { %896 = vmatprep.subr.bf16.mxu1 %v1117_v0  ;;  %900 = vmatprep.mubr.msk.bf16.mxu1 %vm1118_vm0, %v1117_v0  ;;  %v810_v8 = vld [vmem:[%s1289_s2] ss:$0 sm:$0xff]  ;;  %v982_v18 = vld [vmem:[#allocation5 + $0x10] sm:$0xff]   ;;  %v984_v31 = vld [vmem:[#allocation7 + $0x10] sm:$0xff]   ;;  %s800_s24 = sshll.u32 %s1121_s23, 4  ;;  %vm791_vm2 = vcmask 523264   ;;  %s801_s24 = int_to_ptr.vmem [resolvable:$true] %s800_s24 }
  0x39   :  { %75 = vrot.lane.b32.xlu0 %v62_v2, %s1119_s3  ;;  %889 = vmatpush3.bf16.msra.mxu0 %v978_v3  ;;  %v983_v19 = vld [vmem:[#allocation5 + $0x18] sm:$0xff]   ;;  %v985_v32 = vld [vmem:[#allocation7 + $0x18] sm:$0xff]   ;;  %v986_v43 = vld [vmem:[#allocation5 + $0x20] sm:$0xff]   ;;  %p1089_p11 = scmp.lt.s32.totalorder %s801_s24, %s801_s24 }
  0x3a   :  { %890 = vmatprep.subr.bf16.mxu0 %v1117_v0  ;;  %897 = vmatpush3.bf16.msra.mxu1 %v980_v6  ;;  %v814_v20 = vld [vmem:[%s1291_s4] ss:$0 sm:$0xff]  ;;  %v819_v33 = vld [vmem:[%s1289_s2 + $0x1] ss:$0 sm:$0xff]  ;;  %v987_v44 = vld [vmem:[#allocation5 + $0x28] sm:$0xff]  }
  0x3b   :  { %898 = vmatprep.subr.bf16.mxu1 %v1117_v0  ;;  %v824_v45 = vld [vmem:[%s1291_s4 + $0x1] ss:$0 sm:$0xff]  ;;  %v988_v55 = vld [vmem:[#allocation7 + $0x20] sm:$0xff]   ;;  %v829_v57 = vld [vmem:[%s1289_s2 + $0x2] ss:$0 sm:$0xff] }
  0x3c   :  { %v989_v56 = vld [vmem:[#allocation7 + $0x28] sm:$0xff]  }
  0x3d   :  { %891 = vmatpush3.bf16.msra.mxu0 %v979_v4  ;;  %206 = vrot.lane.b32.xlu0 %v61_v1, %s1119_s3  ;;  %v990_v4 = vld [vmem:[#allocation5 + $0x30] sm:$0xff]   ;;  %v834_v6 = vld [vmem:[%s1291_s4 + $0x2] ss:$0 sm:$0xff] }
  0x3e   :  { %904 = vmatprep.subr.bf16.mxu0 %v1117_v0  ;;  %899 = vmatpush3.bf16.msra.mxu1 %v981_v7 }
  0x3f   :  { %912 = vmatprep.subr.bf16.mxu1 %v1117_v0 }
  0xab   :  { %v76_v5 = vpop.permute.xlu0 %75 }
  0xac   :  { %893 = vmatmul.mubr.msk.bf16.vlgmr.msra.gmra.mrb[0].mxu0 %vm89_vm1, %v76_v5  ;;  %v991_v5 = vld [vmem:[#allocation5 + $0x38] sm:$0xff]  }
  0xad   :  { %908 = vmatprep.mubr.msk.bf16.mxu0 %vm1118_vm0, %v1117_v0  ;;  %905 = vmatpush3.bf16.msra.mxu0 %v982_v18  ;;  %v839_v18 = vld [vmem:[%s1289_s2 + $0x3] ss:$0 sm:$0xff] }
  0xae   :  { %906 = vmatprep.subr.bf16.mxu0 %v1117_v0 }
  0xaf   :  { %v207_v27 = vpop.permute.xlu0 %206 }
  0xb1   :  { %907 = vmatpush3.bf16.msra.mxu0 %v983_v19 }
  0xb2   :  { %920 = vmatprep.subr.bf16.mxu0 %v1117_v0 }
 0x17f   :  { %v127_v9 = vpop.f32.mrb[0].mxu0 }
 0x180   :  { %v128_v10 = vadd.f32 %v810_v8, %v127_v9  ;;  %v894_v11 = vpop.f32.mrb[1].mxu0 }
 0x181   :  { %v130_v12 = vpop.f32.mrb[2].mxu0 }
 0x182   :  { %998 = vtanh.f32 %v128_v10  ;;  %v895_v13 = vpop.f32.mrb[3].mxu0 }
 0x18c   :  { %v999_v14 = vpop.eup %998 }
 0x18d   :  { %v134_v15 = vadd.f32 1.0, %v999_v14 }
 0x18f   :  { %v135_v16 = vmul.f32 %v134_v15, %v61_v1 }
 0x191   :  { %v136_v17 = vpack.c.bf16 %v135_v16, %v135_v16 }
 0x193   :  { %901 = vmatmul.mubr.msk.bf16.vlgmr.msra.gmra.mrb[0].mxu1 %vm89_vm1, %v136_v17  ;;  %v993_v17 = vld [vmem:[#allocation7 + $0x38] sm:$0xff]  }
 0x194   :  { %916 = vmatprep.mubr.msk.bf16.mxu1 %vm1118_vm0, %v1117_v0  ;;  %913 = vmatpush3.bf16.msra.mxu1 %v984_v31 }
 0x195   :  { %914 = vmatprep.subr.bf16.mxu1 %v1117_v0 }
 0x198   :  { %915 = vmatpush3.bf16.msra.mxu1 %v985_v32 }
 0x199   :  { %928 = vmatprep.subr.bf16.mxu1 %v1117_v0 }
 0x266   :  { %v197_v21 = vpop.f32.mrb[0].mxu1 }
 0x267   :  { %v198_v22 = vadd.f32 %v814_v20, %v197_v21  ;;  %v902_v23 = vpop.f32.mrb[1].mxu1 }
 0x268   :  { %v200_v24 = vpop.f32.mrb[2].mxu1 }
 0x269   :  { %1000 = vtanh.f32 %v198_v22  ;;  %v903_v25 = vpop.f32.mrb[3].mxu1 }
 0x273   :  { %v1001_v26 = vpop.eup %1000 }
 0x274   :  { %v204_v28 = vadd.f32 1.0, %v1001_v26 }
 0x276   :  { %v209_v29 = vmul.f32 %v207_v27, %v204_v28  ;;  %v994_v28 = vld [vmem:[#allocation5 + $0x40] sm:$0xff]  }
 0x278   :  { %v210_v30 = vpack.c.bf16 %v209_v29, %v209_v29 }
 0x27a   :  { %909 = vmatmul.mubr.msk.bf16.vlgmr.msra.gmra.mrb[4].mxu0 %vm89_vm1, %v210_v30  ;;  %v844_v30 = vld [vmem:[%s1291_s4 + $0x3] ss:$0 sm:$0xff] }
 0x27b   :  { %924 = vmatprep.mubr.msk.bf16.mxu0 %vm1118_vm0, %v1117_v0  ;;  %921 = vmatpush3.bf16.msra.mxu0 %v986_v43 }
 0x27c   :  { %922 = vmatprep.subr.bf16.mxu0 %v1117_v0 }
 0x27f   :  { %923 = vmatpush3.bf16.msra.mxu0 %v987_v44 }
 0x280   :  { %936 = vmatprep.subr.bf16.mxu0 %v1117_v0 }
 0x34d   :  { %v273_v34 = vpop.f32.mrb[4].mxu0 }
 0x34e   :  { %v274_v35 = vadd.f32 %v819_v33, %v273_v34  ;;  %v910_v36 = vpop.f32.mrb[5].mxu0 }
 0x34f   :  { %v276_v37 = vpop.f32.mrb[6].mxu0 }
 0x350   :  { %1002 = vtanh.f32 %v274_v35  ;;  %v911_v38 = vpop.f32.mrb[7].mxu0 }
 0x35a   :  { %v1003_v39 = vpop.eup %1002 }
 0x35b   :  { %v280_v40 = vadd.f32 1.0, %v1003_v39 }
 0x35d   :  { %v281_v41 = vmul.f32 %v280_v40, %v135_v16  ;;  %v992_v16 = vld [vmem:[#allocation7 + $0x30] sm:$0xff]   ;;  %v996_v40 = vld [vmem:[#allocation7 + $0x40] sm:$0xff]  }
 0x35f   :  { %v282_v42 = vpack.c.bf16 %v281_v41, %v281_v41 }
 0x361   :  { %917 = vmatmul.mubr.msk.bf16.vlgmr.msra.gmra.mrb[4].mxu1 %vm89_vm1, %v282_v42  ;;  %v849_v42 = vld [vmem:[%s1289_s2 + $0x4] ss:$0 sm:$0xff]  ;;  %s1120_s2 = smov 32  }
 0x362   :  { %932 = vmatprep.mubr.msk.bf16.mxu1 %vm1118_vm0, %v1117_v0  ;;  %929 = vmatpush3.bf16.msra.mxu1 %v988_v55 }
 0x363   :  { %930 = vmatprep.subr.bf16.mxu1 %v1117_v0 }
 0x366   :  { %931 = vmatpush3.bf16.msra.mxu1 %v989_v56 }
 0x367   :  { %944 = vmatprep.subr.bf16.mxu1 %v1117_v0 }
 0x434   :  { %v345_v46 = vpop.f32.mrb[4].mxu1 }
 0x435   :  { %v346_v47 = vadd.f32 %v824_v45, %v345_v46  ;;  %v918_v48 = vpop.f32.mrb[5].mxu1 }
 0x436   :  { %v348_v49 = vpop.f32.mrb[6].mxu1 }
 0x437   :  { %1004 = vtanh.f32 %v346_v47  ;;  %v919_v50 = vpop.f32.mrb[7].mxu1 }
 0x441   :  { %v1005_v51 = vpop.eup %1004 }
 0x442   :  { %v352_v52 = vadd.f32 1.0, %v1005_v51 }
 0x444   :  { %v353_v53 = vmul.f32 %v352_v52, %v209_v29  ;;  %v995_v29 = vld [vmem:[#allocation5 + $0x48] sm:$0xff]  }
 0x446   :  { %v354_v54 = vpack.c.bf16 %v353_v53, %v353_v53 }
 0x448   :  { %925 = vmatmul.mubr.msk.bf16.vlgmr.msra.gmra.mrb[8].mxu0 %vm89_vm1, %v354_v54 }
 0x449   :  { %940 = vmatprep.mubr.msk.bf16.mxu0 %vm1118_vm0, %v1117_v0  ;;  %937 = vmatpush3.bf16.msra.mxu0 %v990_v4 }
 0x44a   :  { %938 = vmatprep.subr.bf16.mxu0 %v1117_v0 }
 0x44d   :  { %939 = vmatpush3.bf16.msra.mxu0 %v991_v5 }
 0x44e   :  { %952 = vmatprep.subr.bf16.mxu0 %v1117_v0 }
 0x51b   :  { %v417_v58 = vpop.f32.mrb[8].mxu0 }
 0x51c   :  { %v418_v59 = vadd.f32 %v829_v57, %v417_v58  ;;  %v926_v60 = vpop.f32.mrb[9].mxu0 }
 0x51d   :  { %v420_v61 = vpop.f32.mrb[10].mxu0 }
 0x51e   :  { %1006 = vtanh.f32 %v418_v59  ;;  %v927_v62 = vpop.f32.mrb[11].mxu0 }
 0x528   :  { %v1007_v63 = vpop.eup %1006 }
 0x529   :  { %v424_v1 = vadd.f32 1.0, %v1007_v63 }
 0x52b   :  { %v425_v2 = vmul.f32 %v424_v1, %v281_v41  ;;  %v997_v41 = vld [vmem:[#allocation7 + $0x48] sm:$0xff]  }
 0x52d   :  { %v426_v3 = vpack.c.bf16 %v425_v2, %v425_v2 }
 0x52f   :  { %933 = vmatmul.mubr.msk.bf16.vlgmr.msra.gmra.mrb[8].mxu1 %vm89_vm1, %v426_v3 }
 0x530   :  { %948 = vmatprep.mubr.msk.bf16.mxu1 %vm1118_vm0, %v1117_v0  ;;  %945 = vmatpush3.bf16.msra.mxu1 %v992_v16 }
 0x531   :  { %946 = vmatprep.subr.bf16.mxu1 %v1117_v0 }
 0x534   :  { %947 = vmatpush3.bf16.msra.mxu1 %v993_v17 }
 0x535   :  { %960 = vmatprep.subr.bf16.mxu1 %v1117_v0 }
 0x602   :  { %v489_v7 = vpop.f32.mrb[8].mxu1 }
 0x603   :  { %v490_v8 = vadd.f32 %v834_v6, %v489_v7  ;;  %v934_v9 = vpop.f32.mrb[9].mxu1 }
 0x604   :  { %v492_v10 = vpop.f32.mrb[10].mxu1 }
 0x605   :  { %1008 = vtanh.f32 %v490_v8  ;;  %v935_v11 = vpop.f32.mrb[11].mxu1 }
 0x60f   :  { %v1009_v12 = vpop.eup %1008 }
 0x610   :  { %v496_v13 = vadd.f32 1.0, %v1009_v12 }
 0x612   :  { %v497_v14 = vmul.f32 %v496_v13, %v353_v53 }
 0x614   :  { %v498_v15 = vpack.c.bf16 %v497_v14, %v497_v14 }
 0x616   :  { %941 = vmatmul.mubr.msk.bf16.vlgmr.msra.gmra.mrb[12].mxu0 %vm89_vm1, %v498_v15 }
 0x617   :  { %956 = vmatprep.mubr.msk.bf16.mxu0 %vm1118_vm0, %v1117_v0  ;;  %953 = vmatpush3.bf16.msra.mxu0 %v994_v28 }
 0x618   :  { %954 = vmatprep.subr.bf16.mxu0 %v1117_v0 }
 0x61b   :  { %955 = vmatpush3.bf16.msra.mxu0 %v995_v29 }
 0x6e9   :  { %v561_v19 = vpop.f32.mrb[12].mxu0 }
 0x6ea   :  { %v562_v20 = vadd.f32 %v839_v18, %v561_v19  ;;  %v942_v21 = vpop.f32.mrb[13].mxu0 }
 0x6eb   :  { %v564_v22 = vpop.f32.mrb[14].mxu0 }
 0x6ec   :  { %1010 = vtanh.f32 %v562_v20  ;;  %v943_v23 = vpop.f32.mrb[15].mxu0 }
 0x6f6   :  { %v1011_v24 = vpop.eup %1010 }
 0x6f7   :  { %v568_v25 = vadd.f32 1.0, %v1011_v24 }
 0x6f9   :  { %v569_v26 = vmul.f32 %v568_v25, %v425_v2 }
 0x6fb   :  { %v570_v27 = vpack.c.bf16 %v569_v26, %v569_v26 }
 0x6fd   :  { %949 = vmatmul.mubr.msk.bf16.vlgmr.msra.gmra.mrb[12].mxu1 %vm89_vm1, %v570_v27 }
 0x6fe   :  { %964 = vmatprep.mubr.msk.bf16.mxu1 %vm1118_vm0, %v1117_v0  ;;  %961 = vmatpush3.bf16.msra.mxu1 %v996_v40 }
 0x6ff   :  { %962 = vmatprep.subr.bf16.mxu1 %v1117_v0  ;;  %v854_v0 = vld [vmem:[%s1291_s4 + $0x4] ss:$0 sm:$0xff]  ;;  %s1084_s4 = scalar_lea.vmem %s801_s24, 128 }
 0x700   :  { %p1085_p10 = scmp.ne.s32.totalorder %s801_s24, %s1084_s4  ;;  %p1090_p12 = scmp.lt.s32.totalorder %s1084_s4, %s1084_s4 }
 0x702   :  { %963 = vmatpush3.bf16.msra.mxu1 %v997_v41  ;;  %p1091_p13 = por %p1090_p12, %p1089_p11 }
 0x704   :  { %p1092_p0 = pnand %p1091_p13, %p1085_p10 }
 0x7d0   :  { %v633_v31 = vpop.f32.mrb[12].mxu1 }
 0x7d1   :  { %v634_v32 = vadd.f32 %v844_v30, %v633_v31  ;;  %v950_v33 = vpop.f32.mrb[13].mxu1 }
 0x7d2   :  { %v636_v34 = vpop.f32.mrb[14].mxu1 }
 0x7d3   :  { %1012 = vtanh.f32 %v634_v32  ;;  %v951_v35 = vpop.f32.mrb[15].mxu1 }
 0x7dd   :  { %v1013_v36 = vpop.eup %1012 }
 0x7de   :  { %v640_v37 = vadd.f32 1.0, %v1013_v36 }
 0x7e0   :  { %v641_v38 = vmul.f32 %v640_v37, %v497_v14 }
 0x7e2   :  { %v642_v39 = vpack.c.bf16 %v641_v38, %v641_v38 }
 0x7e4   :  { %957 = vmatmul.mubr.msk.bf16.vlgmr.msra.gmra.mrb[16].mxu0 %vm89_vm1, %v642_v39 }
 0x8b7   :  { %v705_v43 = vpop.f32.mrb[16].mxu0 }
 0x8b8   :  { %v706_v44 = vadd.f32 %v849_v42, %v705_v43  ;;  %v958_v45 = vpop.f32.mrb[17].mxu0 }
 0x8b9   :  { %v708_v46 = vpop.f32.mrb[18].mxu0 }
 0x8ba   :  { %1014 = vtanh.f32 %v706_v44  ;;  %v959_v47 = vpop.f32.mrb[19].mxu0 }
 0x8c4   :  { %v1015_v48 = vpop.eup %1014 }
 0x8c5   :  { %v712_v49 = vadd.f32 1.0, %v1015_v48 }
 0x8c7   :  { %v713_v50 = vmul.f32 %v712_v49, %v569_v26 }
 0x8c9   :  { %v714_v51 = vpack.c.bf16 %v713_v50, %v713_v50 }
 0x8cb   :  { %965 = vmatmul.mubr.msk.bf16.vlgmr.msra.gmra.mrb[16].mxu1 %vm89_vm1, %v714_v51 }
 0x99e   :  { %v777_v52 = vpop.f32.mrb[16].mxu1 }
 0x99f   :  { %v778_v53 = vadd.f32 %v854_v0, %v777_v52  ;;  %v966_v54 = vpop.f32.mrb[17].mxu1 }
 0x9a0   :  { %v780_v55 = vpop.f32.mrb[18].mxu1 }
 0x9a1   :  { %1016 = vtanh.f32 %v778_v53  ;;  %v967_v56 = vpop.f32.mrb[19].mxu1 }
 0x9ab   :  { %v1017_v57 = vpop.eup %1016 }
 0x9ac   :  { %v784_v58 = vadd.f32 1.0, %v1017_v57 }
 0x9ae   :  { %v785_v59 = vmul.f32 %v784_v58, %v641_v38 }
 0x9b0   :  { %787 = vrot.lane.b32.xlu1 %v785_v59, %s1120_s2 }
 0xa22   :  { %v788_v60 = vpop.permute.xlu1 %787 }
 0xa23   :  { %v790_v61 = vsel %vm89_vm1, %v713_v50, %v788_v60 }
 0xa24   :  { %v792_v62 = vsel %vm791_vm2, %v790_v61, 0.0 }
 0xa25   :  { %793 = vst [vmem:[#allocation8] sm:$0xff] %v792_v62 }
 0xa26   :  { %1095 = shalt.err (!%p1092_p0)
}
 0xa27   :  { %s1096_s27 = scalar_lea.hbm %s1292_s5, 128 }
 0xa28   :  { %p1097_p1 = scmp.ne.s32.totalorder %s1292_s5, %s1096_s27  ;;  %p1100_p2 = scmp.lt.u32.totalorder %s1096_s27, %s1292_s5 }
 0xa2a   :  { %p1102_p3 = pnand %p1100_p2, %p1097_p1 }
 0xa2c   :  { %1105 = shalt.err (!%p1102_p3)
}
 0xa2d   :  { %803 = dma.vmem_to_hbm [thread:$0]  %s801_s24, 128, %s1292_s5, [#allocation4]  }
 0xa2e   :  { %1110 = dma.done.wait [#allocation4], 128  }
 0xa2f   :  { %1111 = vsyncadd [#allocation4], 4294967168 }
 0xa30   :  { %807 = vsyncpa [#allocation3], 1 }
 0xa31   :  { %808 = vsyncpa [#allocation6], 1 }
 0xa32   :  { %809 = vsyncpa [#allocation4], 1 }

</bundles_post_ra>
